<compile_context>
chip_gen: v5e
topology: v5e:2x2
jax: 0.10.0
libtpu: 0.0.40
codegen_flags: <defaults>
</compile_context>

<pallas_src>
import jax
import jax.numpy as jnp
from jax.experimental import pallas as pl
from jax.experimental.pallas import tpu as pltpu


# ----------------------------------------------------------------------------
# Kernels
# ----------------------------------------------------------------------------

def _silu(z):
    # SiLU(z) = z * sigmoid(z) = 0.5 * z * (1 + tanh(z/2)); one EUP op.
    return 0.5 * z * (1.0 + jnp.tanh(0.5 * z))


def _fused_kernel(x_ref, w_ref, b_ref, o_ref):
    """nk == nn == 1: fully fused, no scratch, no duplicate residual input."""
    z = jnp.dot(x_ref[...], w_ref[...], preferred_element_type=jnp.float32)
    z = z + b_ref[...].astype(jnp.float32)
    o_ref[...] = (x_ref[...].astype(jnp.float32) + _silu(z)).astype(o_ref.dtype)


def _fused_kernel_res(x_ref, xres_ref, w_ref, b_ref, o_ref):
    """nk == 1, nn > 1: single-K matmul, separate N-slice of x for the residual."""
    z = jnp.dot(x_ref[...], w_ref[...], preferred_element_type=jnp.float32)
    z = z + b_ref[...].astype(jnp.float32)
    o_ref[...] = (xres_ref[...].astype(jnp.float32) + _silu(z)).astype(o_ref.dtype)


def _acc_kernel(x_ref, xres_ref, w_ref, b_ref, o_ref, acc_ref):
    """nk > 1: f32 VMEM accumulator over the (last, 'arbitrary') K grid axis."""
    k = pl.program_id(2)
    part = jnp.dot(x_ref[...], w_ref[...], preferred_element_type=jnp.float32)

    @pl.when(k == 0)
    def _first():                       # direct write: no zero-init store+load
        acc_ref[...] = part

    @pl.when(k > 0)
    def _rest():
        acc_ref[...] += part

    @pl.when(k == pl.num_programs(2) - 1)
    def _finalize():
        z = acc_ref[...] + b_ref[...].astype(jnp.float32)
        o_ref[...] = (xres_ref[...].astype(jnp.float32) + _silu(z)).astype(o_ref.dtype)


# ----------------------------------------------------------------------------
# Tile selection
# ----------------------------------------------------------------------------

def _round_up(v, m):
    return (v + m - 1) // m * m


def _vmem_capacity_bytes():
    try:
        return int(pltpu.get_tpu_info().vmem_capacity_bytes)
    except Exception:
        return 64 * 1024 * 1024      # conservative: v7x per-TensorCore VMEM


def _hidden_tile_candidates(Hp):
    cands = {Hp}
    for c in (4096, 2048, 1024, 512, 384, 256, 128):
        if c < Hp and Hp % c == 0:
            cands.add(c)
    return sorted(cands, reverse=True)


def _row_tile_candidates(Mp8):
    cands = {Mp8}
    for c in (2048, 1024, 512, 256, 128, 64, 32, 16, 8):
        if c < Mp8:
            cands.add(c)
    return sorted(cands, reverse=True)


def _footprint_bytes(tm, tn, tk, Hp, in_b, out_b):
    """Double-buffered per-step VMEM footprint for the chosen kernel variant."""
    nk, nn = Hp // tk, Hp // tn
    tot = 2 * (tm * tk * in_b + tk * tn * in_b + 8 * tn * in_b) + 2 * tm * tn * out_b
    if not (nk == 1 and nn == 1):
        tot += 2 * tm * tn * in_b        # duplicate x input for the residual
    if nk > 1:
        tot += tm * tn * 4               # f32 accumulator scratch
    return tot


def _select_tiles(M, Hp, in_b, out_b, budget):
    """Pick (tm, tn, tk) minimizing estimated HBM traffic + step overhead."""
    Mp8 = _round_up(max(M, 1), 8)
    best_key, best = None, None
    for tk in _hidden_tile_candidates(Hp):
        for tn in _hidden_tile_candidates(Hp):
            for tm in _row_tile_candidates(Mp8):
                if _footprint_bytes(tm, tn, tk, Hp, in_b, out_b) > budget:
                    continue
                Mp = _round_up(M, tm)
                nm, nn, nk = Mp // tm, Hp // tn, Hp // tk
                x_b, w_b, o_b = Mp * Hp * in_b, Hp * Hp * in_b, Mp * Hp * out_b
                if nk == 1:
                    traffic = x_b + (x_b if nn > 1 else 0) + nm * w_b + o_b
                else:
                    traffic = (nn + 1) * x_b + nm * w_b + o_b
                steps = nm * nn * nk
                key = (traffic + steps * 300_000, steps, -tm)
                if best_key is None or key < best_key:
                    best_key, best = key, (tm, tn, tk)
    if best is None:                      # last resort (tiny budget)
        best = (min(_row_tile_candidates(Mp8)),
                min(_hidden_tile_candidates(Hp)),
                min(_hidden_tile_candidates(Hp)))
    tm, tn, tk = best

    # v7x megacore: keep >= 2 parallel blocks when the problem is big enough.
    Mp = _round_up(M, tm)
    nm, nn = Mp // tm, Hp // tn
    if nm * nn == 1 and Mp * Hp >= (1 << 18):
        col_ok = (Hp % 256 == 0)          # tn stays a multiple of 128
        row_ok = (Mp % 16 == 0)           # tm stays a multiple of 8
        # Column split costs one extra x pass; row split one extra W pass.
        if col_ok and (Mp <= Hp or not row_ok):
            tn = Hp // 2
        elif row_ok:
            tm = Mp // 2
    return tm, tn, tk


# ----------------------------------------------------------------------------
# Parameter prep (one-time, outside the per-call path)
# ----------------------------------------------------------------------------

def prepare_resblock_params(weight_oi, bias):
    """[out,in] -> [in,out] transpose + lane padding, done once at load time."""
    H = weight_oi.shape[0]
    Hp = _round_up(H, 128)
    # Prefer 256-aligned lanes (v6e/v7x MXU is 256-wide) when the extra
    # padding is a modest fraction of the hidden size.
    if Hp % 256 != 0 and Hp >= 512:
        Hp = _round_up(Hp, 256)
    w_io = weight_oi.T
    if Hp != H:
        w_io = jnp.pad(w_io, ((0, Hp - H), (0, Hp - H)))
        bias = jnp.pad(bias, (0, Hp - H))
    return w_io, bias.reshape(1, Hp)


# ----------------------------------------------------------------------------
# Forward wrapper
# ----------------------------------------------------------------------------

def resblock(x, w_io_p, bias_p, *, tm=None, tn=None, tk=None):
    """ResBlock forward: x + SiLU(x @ W^T + b).

    x:       (..., H) activations (f32 or bf16).
    w_io_p:  (Hp, Hp) weight in [in, out] layout, lane-padded (prepare_resblock_params).
    bias_p:  (1, Hp)  lane-padded bias.
    """
    orig_shape = x.shape
    H = orig_shape[-1]
    Hp = w_io_p.shape[0]
    x2 = x.reshape(-1, H)
    M = x2.shape[0]
    in_b = x2.dtype.itemsize
    out_b = in_b

    vmem_cap = _vmem_capacity_bytes()
    budget = int(vmem_cap * 0.7)          # ~45 MiB on v7x, ~90 MiB on v5e/v6e

    if tm is None or tn is None or tk is None:
        atm, atn, atk = _select_tiles(M, Hp, in_b, out_b, budget)
        tm = tm if tm is not None else atm
        tn = tn if tn is not None else atn
        tk = tk if tk is not None else atk
    Mp = _round_up(M, tm)
    assert Mp % tm == 0 and Hp % tn == 0 and Hp % tk == 0

    # Per-call padding only for ragged activation shapes (weights/bias are
    # padded once at load time).
    if (Mp, Hp) != (M, H):
        x2 = jnp.pad(x2, ((0, Mp - M), (0, Hp - H)))

    nm, nn, nk = Mp // tm, Hp // tn, Hp // tk
    foot = _footprint_bytes(tm, tn, tk, Hp, in_b, out_b)
    vmem_limit = int(min(max(foot * 3 // 2, 24 * 1024 * 1024),
                         int(vmem_cap * 0.9)))

    if nk == 1:
        if nn == 1:
            kernel = _fused_kernel
            in_specs = [
                pl.BlockSpec((tm, Hp), lambda i, j: (i, 0)),   # x (matmul + residual)
                pl.BlockSpec((Hp, tn), lambda i, j: (0, j)),   # W [in, out]
                pl.BlockSpec((1, tn), lambda i, j: (0, j)),    # bias
            ]
            operands = (x2, w_io_p, bias_p)
        else:
            kernel = _fused_kernel_res
            in_specs = [
                pl.BlockSpec((tm, Hp), lambda i, j: (i, 0)),   # x matmul slab
                pl.BlockSpec((tm, tn), lambda i, j: (i, j)),   # x residual N-slice
                pl.BlockSpec((Hp, tn), lambda i, j: (0, j)),   # W
                pl.BlockSpec((1, tn), lambda i, j: (0, j)),    # bias
            ]
            operands = (x2, x2, w_io_p, bias_p)
        out_specs = pl.BlockSpec((tm, tn), lambda i, j: (i, j))
        grid = (nm, nn)
        scratch = []
        dims = ("parallel", "parallel")
    else:
        kernel = _acc_kernel
        in_specs = [
            pl.BlockSpec((tm, tk), lambda i, j, k: (i, k)),    # x K-slice
            pl.BlockSpec((tm, tn), lambda i, j, k: (i, j)),    # x residual N-slice
            pl.BlockSpec((tk, tn), lambda i, j, k: (k, j)),    # W
            pl.BlockSpec((1, tn), lambda i, j, k: (0, j)),     # bias
        ]
        operands = (x2, x2, w_io_p, bias_p)
        out_specs = pl.BlockSpec((tm, tn), lambda i, j, k: (i, j))
        grid = (nm, nn, nk)
        scratch = [pltpu.VMEM((tm, tn), jnp.float32)]
        dims = ("parallel", "parallel", "arbitrary")

    out = pl.pallas_call(
        kernel,
        out_shape=jax.ShapeDtypeStruct((Mp, Hp), x.dtype),
        grid_spec=pltpu.PrefetchScalarGridSpec(
            num_scalar_prefetch=0,
            grid=grid,
            in_specs=in_specs,
            out_specs=out_specs,
            scratch_shapes=scratch,
        ),
        compiler_params=pltpu.CompilerParams(
            dimension_semantics=dims,
            vmem_limit_bytes=vmem_limit,
        ),
    )(*operands)

    if (Mp, Hp) != (M, H):
        out = out[:M, :H]
    return out.reshape(orig_shape)


def _ref(x, w_oi, b):
    z = x @ w_oi.T + b
    return x + z * jax.nn.sigmoid(z)


if __name__ == "__main__":
    # ---- small shapes implied by the module: (batch, seq, hidden) ----
    batch, seq, hidden = 2, 8, 32
    kx, kw, kb = jax.random.split(jax.random.PRNGKey(0), 3)

    x = jax.random.normal(kx, (batch, seq, hidden), dtype=jnp.float32)

    bound = 1.0 / (hidden ** 0.5)
    weight_oi = jax.random.normal(kw, (hidden, hidden), dtype=jnp.float32) * 0.05
    bias = jax.random.uniform(kb, (hidden,), minval=-bound, maxval=bound,
                              dtype=jnp.float32)

    # One-time parameter prep ([out,in] -> [in,out], lane padding).
    w_p, b_p = prepare_resblock_params(weight_oi, bias)

    # f32, random weight: fused single-step kernel + H=32 -> 128 lane padding.
    y = resblock(x, w_p, b_p)
    jax.block_until_ready(y)
    assert jnp.allclose(y, _ref(x, weight_oi, bias), atol=1e-4, rtol=1e-4)

    # Module's actual zero-init weight: y = x + SiLU(bias).
    w0_p, b0_p = prepare_resblock_params(jnp.zeros_like(weight_oi), bias)
    y0 = resblock(x, w0_p, b0_p)
    assert jnp.allclose(y0, _ref(x, jnp.zeros_like(weight_oi), bias),
                        atol=1e-4, rtol=1e-4)

    # Ragged row count (M=13, not a multiple of 8) exercises row padding.
    xr = jax.random.normal(jax.random.PRNGKey(2), (1, 13, hidden), jnp.float32)
    yr = resblock(xr, w_p, b_p)
    assert jnp.allclose(yr, _ref(xr, weight_oi, bias), atol=1e-4, rtol=1e-4)

    # bf16 at a larger shape: exercises large-tile selection and the
    # two-parallel-block (v7x megacore) split -> nn=2 fused kernel w/ residual input.
    B2, S2, H2 = 2, 256, 1024
    kx2, kw2, kb2 = jax.random.split(jax.random.PRNGKey(1), 3)
    xb = jax.random.normal(kx2, (B2, S2, H2), jnp.float32).astype(jnp.bfloat16)
    wb_oi = (jax.random.normal(kw2, (H2, H2), jnp.float32) * 0.02).astype(jnp.bfloat16)
    bb = jax.random.uniform(kb2, (H2,), minval=-0.03, maxval=0.03).astype(jnp.bfloat16)
    wb_p, bb_p = prepare_resblock_params(wb_oi, bb)
    yb = resblock(xb, wb_p, bb_p)
    jax.block_until_ready(yb)
    yb_ref = _ref(xb.astype(jnp.float32), wb_oi.astype(jnp.float32),
                  bb.astype(jnp.float32))
    assert jnp.allclose(yb.astype(jnp.float32), yb_ref, atol=3e-2, rtol=3e-2)

    # Force the multi-K accumulator kernel (nk > 1) to validate that path too.
    yb2 = resblock(xb, wb_p, bb_p, tm=128, tn=256, tk=256)
    jax.block_until_ready(yb2)
    assert jnp.allclose(yb2.astype(jnp.float32), yb_ref, atol=3e-2, rtol=3e-2)

    print("KERNEL_OK")
</pallas_src>

<mosaic_0001>
module attributes {stable_mosaic.version = 11 : i64} {
  func.func @_fused_kernel(%arg0: i32, %arg1: i32, %arg2: memref<16x128xf32, #tpu.memory_space<vmem>>, %arg3: memref<128x128xf32, #tpu.memory_space<vmem>>, %arg4: memref<1x128xf32, #tpu.memory_space<vmem>>, %arg5: memref<16x128xf32, #tpu.memory_space<vmem>>) attributes {dimension_semantics = [#tpu.dimension_semantics<parallel>, #tpu.dimension_semantics<parallel>], iteration_bounds = array<i64: 1, 1>, scalar_prefetch = 0 : i64, scratch_operands = 0 : i64, tpu.core_type = #tpu.core_type<tc>, window_params = [{transform_indices = @transform_0, window_bounds = array<i64: 16, 128>}, {transform_indices = @transform_1, window_bounds = array<i64: 128, 128>}, {transform_indices = @transform_2, window_bounds = array<i64: 1, 128>}, {transform_indices = @transform_3, window_bounds = array<i64: 16, 128>}]} {
    %c0 = arith.constant 0 : index
    %c0_0 = arith.constant 0 : index
    %0 = vector.load %arg2[%c0, %c0_0] : memref<16x128xf32, #tpu.memory_space<vmem>>, vector<16x128xf32>
    %c0_1 = arith.constant 0 : index
    %c0_2 = arith.constant 0 : index
    %1 = vector.load %arg3[%c0_1, %c0_2] : memref<128x128xf32, #tpu.memory_space<vmem>>, vector<128x128xf32>
    %cst = arith.constant dense<0.000000e+00> : vector<16x128xf32>
    %2 = tpu.matmul %0, %1, %cst {dimension_numbers = #tpu.dot_dimension_numbers<[1], [0], [0], [1], [0, 0, 1, 1], [], []>} : vector<16x128xf32>, vector<128x128xf32>, vector<16x128xf32> -> vector<16x128xf32>
    %c0_3 = arith.constant 0 : index
    %c0_4 = arith.constant 0 : index
    %3 = vector.load %arg4[%c0_3, %c0_4] : memref<1x128xf32, #tpu.memory_space<vmem>>, vector<1x128xf32>
    %4 = vector.broadcast %3 : vector<1x128xf32> to vector<16x128xf32>
    %5 = arith.addf %2, %4 : vector<16x128xf32>
    %c0_5 = arith.constant 0 : index
    %c0_6 = arith.constant 0 : index
    %6 = vector.load %arg2[%c0_5, %c0_6] : memref<16x128xf32, #tpu.memory_space<vmem>>, vector<16x128xf32>
    %cst_7 = arith.constant 5.000000e-01 : f32
    %7 = vector.broadcast %cst_7 : f32 to vector<16x128xf32>
    %8 = arith.mulf %7, %5 : vector<16x128xf32>
    %cst_8 = arith.constant 5.000000e-01 : f32
    %9 = vector.broadcast %cst_8 : f32 to vector<16x128xf32>
    %10 = arith.mulf %9, %5 : vector<16x128xf32>
    %11 = math.tanh %10 : vector<16x128xf32>
    %cst_9 = arith.constant 1.000000e+00 : f32
    %12 = vector.broadcast %cst_9 : f32 to vector<16x128xf32>
    %13 = arith.addf %12, %11 : vector<16x128xf32>
    %14 = arith.mulf %8, %13 : vector<16x128xf32>
    %15 = arith.addf %6, %14 : vector<16x128xf32>
    %c0_10 = arith.constant 0 : index
    %c0_11 = arith.constant 0 : index
    %16 = vector.load %arg5[%c0_10, %c0_11] : memref<16x128xf32, #tpu.memory_space<vmem>>, vector<16x128xf32>
    tpu.vector_store %arg5[%c0_10, %c0_11], %15 {strides = array<i32>} : memref<16x128xf32, #tpu.memory_space<vmem>>, vector<16x128xf32>,
    return
  }
  func.func @transform_0(%arg0: i32, %arg1: i32) -> (i32, i32) {
    %c0_i32 = arith.constant 0 : i32
    %c0_i32_0 = arith.constant 0 : i32
    return %arg0, %c0_i32 : i32, i32
  }
  func.func @transform_1(%arg0: i32, %arg1: i32) -> (i32, i32) {
    %c0_i32 = arith.constant 0 : i32
    %c0_i32_0 = arith.constant 0 : i32
    return %c0_i32, %arg1 : i32, i32
  }
  func.func @transform_2(%arg0: i32, %arg1: i32) -> (i32, i32) {
    %c0_i32 = arith.constant 0 : i32
    %c0_i32_0 = arith.constant 0 : i32
    return %c0_i32, %arg1 : i32, i32
  }
  func.func @transform_3(%arg0: i32, %arg1: i32) -> (i32, i32) {
    %c0_i32 = arith.constant 0 : i32
    return %arg0, %arg1 : i32, i32
  }
}

</mosaic_0001>

<bundles_post_ra>
// kernel: tpu_custom_call.1
= control target key start
LH: loop header
LB: loop body
LE: loop exit
PB: predicated region body
PF: predicated region fallthrough
CT: control target
= control target key end

     0   :  { %8 = vsyncpa [#allocation3], 0  ;;  %s274_s0 = inlined_call_operand.hbm [shape: f32[16,128], index: 0, kind: input, shape index: {}]   ;;  %s275_s1 = inlined_call_operand.hbm [shape: f32[128,128], index: 1, kind: input, shape index: {}]   ;;  %s276_s2 = inlined_call_operand.vmem [shape: f32[1,128], index: 2, kind: input, shape index: {}]   ;;  %s277_s3 = inlined_call_operand.hbm [shape: f32[16,128], index: 3, kind: output, shape index: {}]  }
   0x1   :  { %9 = vsyncpa [#allocation6], 0 }
   0x2   :  { %10 = vsyncpa [#allocation4], 0  ;;  %s15_s14 = sshll.u32 %s274_s0, 4  ;;  %s228_s15 = smov [#allocation2]   ;;  %s16_s14 = int_to_ptr.hbm [resolvable:$true] %s15_s14 }
   0x3   :  { %s17_s16 = sshll.u32 %s228_s15, 4  ;;  %s28_s19 = sshll.u32 %s275_s1, 4  ;;  %s18_s16 = int_to_ptr.vmem [resolvable:$true] %s17_s16  ;;  %s29_s19 = int_to_ptr.hbm [resolvable:$true] %s28_s19 }
   0x4   :  { %s229_s20 = smov 128   ;;  %s230_s21 = smov 8  }
   0x5   :  { %23 = dma.hbm_to_vmem [thread:$0]  %s16_s14, 256, %s18_s16, [#allocation3], %s229_s20, %s229_s20, %s230_s21  }
   0x6   :  { %s231_s22 = smov [#allocation5]  }
   0x7   :  { %s30_s23 = sshll.u32 %s231_s22, 4  ;;  %s31_s23 = int_to_ptr.vmem [resolvable:$true] %s30_s23 }
   0x8   :  { %36 = dma.hbm_to_vmem [thread:$0]  %s29_s19, 2048, %s31_s23, [#allocation6], %s229_s20, %s229_s20, %s230_s21  }
   0x9   :  { %222 = dma.done.wait [#allocation3], 256  }
   0xa   :  { %223 = vsyncadd [#allocation3], 4294967040 }
   0xb   :  { %224 = dma.done.wait [#allocation6], 2048  }
   0xc   :  { %225 = vsyncadd [#allocation6], 4294965248  ;;  %v64_v0 = vld [vmem:[#allocation5 + $0x78] sm:$0xff]  ;;  %v63_v1 = vld [vmem:[#allocation5 + $0x70] sm:$0xff]  ;;  %s232_s24 = smov [#allocation7]   ;;  %s110_s28 = sshll.u32 %s277_s3, 4  ;;  %s111_s28 = int_to_ptr.hbm [resolvable:$true] %s110_s28 }
   0xd   :  { %69 = vmatpush.msra.mxu0 %v64_v0  ;;  %124 = vmatpush.msra.mxu1 %v64_v0  ;;  %v62_v2 = vld [vmem:[#allocation5 + $0x68] sm:$0xff]  ;;  %v61_v3 = vld [vmem:[#allocation5 + $0x60] sm:$0xff]  ;;  %v60_v4 = vld [vmem:[#allocation5 + $0x58] sm:$0xff]  ;;  %s108_s25 = sshll.u32 %s232_s24, 4  ;;  %s109_s25 = int_to_ptr.vmem [resolvable:$true] %s108_s25 }
   0xe   :  { %v59_v5 = vld [vmem:[#allocation5 + $0x50] sm:$0xff]  ;;  %v58_v6 = vld [vmem:[#allocation5 + $0x48] sm:$0xff]  ;;  %v57_v7 = vld [vmem:[#allocation5 + $0x40] sm:$0xff] }
   0xf   :  { %70 = vmatpush.msra.mxu0 %v63_v1  ;;  %125 = vmatpush.msra.mxu1 %v63_v1  ;;  %v56_v8 = vld [vmem:[#allocation5 + $0x38] sm:$0xff]  ;;  %v55_v9 = vld [vmem:[#allocation5 + $0x30] sm:$0xff]  ;;  %v54_v10 = vld [vmem:[#allocation5 + $0x28] sm:$0xff] }
  0x10   :  { %v53_v11 = vld [vmem:[#allocation5 + $0x20] sm:$0xff]  ;;  %v52_v12 = vld [vmem:[#allocation5 + $0x18] sm:$0xff]  ;;  %v51_v13 = vld [vmem:[#allocation5 + $0x10] sm:$0xff] }
  0x11   :  { %71 = vmatpush.msra.mxu0 %v62_v2  ;;  %126 = vmatpush.msra.mxu1 %v62_v2  ;;  %v50_v14 = vld [vmem:[#allocation5 + $0x8] sm:$0xff]  ;;  %v49_v15 = vld [vmem:[#allocation5] sm:$0xff]  ;;  %v47_v16 = vld [vmem:[#allocation2] sm:$0xff] }
  0x12   :  { %v48_v17 = vld [vmem:[#allocation2 + $0x8] sm:$0xff]  ;;  %v145_v18 = vld [vmem:[%s276_s2] ss:$0 sm:$0xff] }
  0x13   :  { %72 = vmatpush.msra.mxu0 %v61_v3  ;;  %127 = vmatpush.msra.mxu1 %v61_v3 }
  0x15   :  { %73 = vmatpush.msra.mxu0 %v60_v4  ;;  %128 = vmatpush.msra.mxu1 %v60_v4 }
  0x17   :  { %74 = vmatpush.msra.mxu0 %v59_v5  ;;  %129 = vmatpush.msra.mxu1 %v59_v5 }
  0x19   :  { %75 = vmatpush.msra.mxu0 %v58_v6  ;;  %130 = vmatpush.msra.mxu1 %v58_v6 }
  0x1b   :  { %76 = vmatpush.msra.mxu0 %v57_v7  ;;  %131 = vmatpush.msra.mxu1 %v57_v7 }
  0x1d   :  { %77 = vmatpush.msra.mxu0 %v56_v8  ;;  %132 = vmatpush.msra.mxu1 %v56_v8 }
  0x1f   :  { %78 = vmatpush.msra.mxu0 %v55_v9  ;;  %133 = vmatpush.msra.mxu1 %v55_v9 }
  0x21   :  { %79 = vmatpush.msra.mxu0 %v54_v10  ;;  %134 = vmatpush.msra.mxu1 %v54_v10 }
  0x23   :  { %80 = vmatpush.msra.mxu0 %v53_v11  ;;  %135 = vmatpush.msra.mxu1 %v53_v11 }
  0x25   :  { %81 = vmatpush.msra.mxu0 %v52_v12  ;;  %136 = vmatpush.msra.mxu1 %v52_v12 }
  0x27   :  { %82 = vmatpush.msra.mxu0 %v51_v13  ;;  %137 = vmatpush.msra.mxu1 %v51_v13 }
  0x29   :  { %83 = vmatpush.msra.mxu0 %v50_v14  ;;  %138 = vmatpush.msra.mxu1 %v50_v14 }
  0x2b   :  { %84 = vmatpush.msra.mxu0 %v49_v15  ;;  %139 = vmatpush.msra.mxu1 %v49_v15 }
  0x2c   :  { %85 = vmatmul.f32.vlgmr.msra.gmra.mxu0 %v47_v16  ;;  %88 = vmatmul.f32.vlgmr.msra.gmra.mxu1 %v48_v17 }
  0xa9   :  { %v86_v19 = vpop.f32.mrf.mxu0  ;;  %v89_v20 = vpop.f32.mrf.mxu1 }
  0xaa   :  { %v87_v21 = vadd.f32 %v145_v18, %v86_v19  ;;  %v90_v22 = vadd.f32 %v145_v18, %v89_v20 }
  0xac   :  { %v92_v23 = vmul.f32 0.5, %v87_v21  ;;  %v93_v24 = vmul.f32 0.5, %v90_v22 }
  0xae   :  { %146 = vtanh.f32 %v92_v23 }
  0xaf   :  { %148 = vtanh.f32 %v93_v24 }
  0xb4   :  { %v147_v25 = vpop.eup %146 }
  0xb5   :  { %v149_v26 = vpop.eup %148  ;;  %v96_v27 = vadd.f32 1.0, %v147_v25 }
  0xb6   :  { %v97_v28 = vadd.f32 1.0, %v149_v26 }
  0xb7   :  { %v98_v29 = vmul.f32 %v96_v27, %v92_v23 }
  0xb8   :  { %v99_v30 = vmul.f32 %v97_v28, %v93_v24 }
  0xb9   :  { %v100_v31 = vadd.f32 %v98_v29, %v47_v16 }
  0xba   :  { %v101_v32 = vadd.f32 %v99_v30, %v48_v17 }
  0xbb   :  { %102 = vst [vmem:[#allocation7] sm:$0xff] %v100_v31 }
  0xbc   :  { %103 = vst [vmem:[#allocation7 + $0x8] sm:$0xff] %v101_v32 }
  0xbd   :  { %116 = dma.vmem_to_hbm [thread:$0]  %s109_s25, 256, %s111_s28, [#allocation4], %s229_s20, %s229_s20, %s230_s21  }
  0xbe   :  { %226 = dma.done.wait [#allocation4], 256  }
  0xbf   :  { %227 = vsyncadd [#allocation4], 4294967040 }
  0xc0   :  { %121 = vsyncpa [#allocation3], 1 }
  0xc1   :  { %122 = vsyncpa [#allocation6], 1 }
  0xc2   :  { %123 = vsyncpa [#allocation4], 1 }

</bundles_post_ra>
